<compile_context>
chip_gen: v6e
topology: v6e:2x2x1
jax: 0.10.0
libtpu: 0.0.40
codegen_flags: <defaults>
</compile_context>

<pallas_src>
import functools

import jax
import jax.numpy as jnp
from jax.experimental import pallas as pl
from jax.experimental.pallas import tpu as pltpu

_LANE = 128


def _dice_kernel(pred_ref, tgt_ref, chan_ref, dice_ref, inter_acc, union_acc,
                 *, smooth: float, union_pad_correction: float):
    # pred_ref: (C, S, 128) float     tgt_ref:  (S, 128) int32
    # chan_ref: (C, 1, 128) int32     dice_ref: (C, 1, 1) f32
    # inter_acc / union_acc: (C, 1, 128) f32 lane-wide VMEM accumulators
    t = pl.program_id(1)

    @pl.when(t == 0)
    def _():
        inter_acc[...] = jnp.zeros_like(inter_acc)
        union_acc[...] = jnp.zeros_like(union_acc)

    x = pred_ref[...].astype(jnp.float32)            # (C, S, 128)
    tgt = tgt_ref[...]                               # (S, 128) int32

    # Channel softmax: channels on the leading (plane) axis -> elementwise
    # across fully packed (S, 128) planes (pure VPU, no cross-lane work).
    m = jnp.max(x, axis=0, keepdims=True)            # (1, S, 128)
    e = jnp.exp(x - m)                               # (C, S, 128)
    denom = jnp.sum(e, axis=0, keepdims=True)        # (1, S, 128)
    # One EUP reciprocal per pixel + C multiplies (not C divides per pixel).
    inv = pl.reciprocal(denom, approx=True)
    p = e * inv                                      # (C, S, 128)

    # Fused one-hot: compare against per-channel ids (no float one-hot tensor).
    eq = tgt[None, :, :] == chan_ref[...]            # (C, S, 128) bool

    # Per-tile partial sums over the sublane (S) axis only -> (C, 1, 128).
    # The expensive cross-lane reduce is deferred to the final grid step.
    inter_acc[...] += jnp.sum(jnp.where(eq, p, 0.0), axis=1, keepdims=True)
    union_acc[...] += jnp.sum(p + jnp.where(eq, 1.0, 0.0), axis=1, keepdims=True)

    @pl.when(t == pl.num_programs(1) - 1)
    def _():
        # Single lane reduce per channel for the whole batch element.
        inter = jnp.sum(inter_acc[...], axis=2, keepdims=True)      # (C, 1, 1)
        union = jnp.sum(union_acc[...], axis=2, keepdims=True)      # (C, 1, 1)
        # Closed-form removal of zero-logit padded pixels' softmax mass.
        union = union - union_pad_correction
        dice_ref[...] = (2.0 * inter + smooth) / (union + smooth)


def dice_loss(pred: jax.Array, target: jax.Array, smooth: float = 1.0) -> jax.Array:
    """pred: (B, C, H, W) float logits; target: (B, H, W) integer class labels."""
    B, C, H, W = pred.shape
    HW = H * W
    rows = pl.cdiv(HW, _LANE)

    # Generation-aware tile budget / VMEM limit.
    try:
        vmem_cap = pltpu.get_tpu_info().vmem_capacity_bytes
    except Exception:  # pragma: no cover - fall back to conservative sizing
        vmem_cap = 64 << 20
    if vmem_cap >= (100 << 20):          # v5e / v6e: 128 MiB physical VMEM
        tile_budget = 2 << 20            # ~2 MiB f32-equivalent pred tile
        vmem_limit = 64 << 20
    else:                                # v7x: 64 MiB physical VMEM
        tile_budget = 1 << 20
        vmem_limit = 32 << 20

    cap = tile_budget // (C * _LANE * 4)
    cap = max(8, min(2048, (cap // 8) * 8))
    if rows <= cap:
        s_tile = rows                    # single spatial tile (block == full extent)
        rows_pad = rows
    else:
        s_tile = cap                     # multiple of 8 -> satisfies (8, 128) tiling
        rows_pad = pl.cdiv(rows, s_tile) * s_tile
    n_t = rows_pad // s_tile
    hw_pad = rows_pad * _LANE
    total_pad = hw_pad - HW

    pred_flat = pred.reshape(B, C, HW)
    tgt_flat = target.astype(jnp.int32).reshape(B, HW)
    if total_pad:
        pred_flat = jnp.pad(pred_flat, ((0, 0), (0, 0), (0, total_pad)))
        # Out-of-range label so the one-hot of padded pixels is all zeros.
        tgt_flat = jnp.pad(tgt_flat, ((0, 0), (0, total_pad)), constant_values=C)

    pred_tiled = pred_flat.reshape(B, C, rows_pad, _LANE)   # pixels on (sublane, lane)
    tgt_tiled = tgt_flat.reshape(B, rows_pad, _LANE)
    # Channel ids built once here (tiny resident block inside the kernel).
    chan_ids = jax.lax.broadcasted_iota(jnp.int32, (C, 1, _LANE), 0)

    kernel = functools.partial(
        _dice_kernel,
        smooth=float(smooth),
        union_pad_correction=float(total_pad) / float(C))

    dice = pl.pallas_call(
        kernel,
        out_shape=jax.ShapeDtypeStruct((B, C, 1, 1), jnp.float32),
        grid_spec=pltpu.PrefetchScalarGridSpec(
            num_scalar_prefetch=0,
            grid=(B, n_t),
            in_specs=[
                pl.BlockSpec((None, C, s_tile, _LANE), lambda b, t: (b, 0, t, 0)),
                pl.BlockSpec((None, s_tile, _LANE), lambda b, t: (b, t, 0)),
                pl.BlockSpec((C, 1, _LANE), lambda b, t: (0, 0, 0)),
            ],
            out_specs=pl.BlockSpec((None, C, 1, 1), lambda b, t: (b, 0, 0, 0)),
            scratch_shapes=[
                pltpu.VMEM((C, 1, _LANE), jnp.float32),   # intersection accumulator
                pltpu.VMEM((C, 1, _LANE), jnp.float32),   # union accumulator
            ],
        ),
        compiler_params=pltpu.CompilerParams(
            dimension_semantics=("parallel", "arbitrary"),
            vmem_limit_bytes=vmem_limit,
        ),
    )(pred_tiled, tgt_tiled, chan_ids)                # (B, C, 1, 1)

    dice = dice.reshape(B, C)
    return 1.0 - jnp.mean(dice)


def _dice_loss_ref(pred, target, smooth=1.0):
    # pure-JAX reference mirroring the PyTorch module
    p = jax.nn.softmax(pred.astype(jnp.float32), axis=1)
    C = pred.shape[1]
    onehot = jax.nn.one_hot(target.astype(jnp.int32), C, dtype=jnp.float32)
    onehot = jnp.transpose(onehot, (0, 3, 1, 2))
    inter = jnp.sum(p * onehot, axis=(2, 3))
    union = jnp.sum(p, axis=(2, 3)) + jnp.sum(onehot, axis=(2, 3))
    dice = (2.0 * inter + smooth) / (union + smooth)
    return 1.0 - jnp.mean(dice)


if __name__ == "__main__":
    key = jax.random.PRNGKey(0)
    k1, k2 = jax.random.split(key)
    B, C, H, W = 2, 4, 16, 16
    pred = jax.random.normal(k1, (B, C, H, W), dtype=jnp.float32)
    target = jax.random.randint(k2, (B, H, W), 0, C, dtype=jnp.int32)

    loss = dice_loss(pred, target, smooth=1.0)
    loss = jax.block_until_ready(loss)

    ref = _dice_loss_ref(pred, target, smooth=1.0)
    # Tolerance loosened slightly for the approx (EUP) reciprocal in softmax.
    assert jnp.allclose(loss, ref, atol=1e-3, rtol=1e-3), (loss, ref)

    print("KERNEL_OK")
</pallas_src>

<mosaic_0001>
module attributes {stable_mosaic.version = 11 : i64} {
  func.func @_dice_kernel(%arg0: i32, %arg1: i32, %arg2: memref<1x4x2x128xf32, #tpu.memory_space<vmem>>, %arg3: memref<1x2x128xi32, #tpu.memory_space<vmem>>, %arg4: memref<4x1x128xi32, #tpu.memory_space<vmem>>, %arg5: memref<1x4x1x1xf32, #tpu.memory_space<vmem>>, %arg6: memref<4x1x128xf32, #tpu.memory_space<vmem>>, %arg7: memref<4x1x128xf32, #tpu.memory_space<vmem>>) attributes {dimension_semantics = [#tpu.dimension_semantics<parallel>, #tpu.dimension_semantics<arbitrary>], iteration_bounds = array<i64: 2, 1>, scalar_prefetch = 0 : i64, scratch_operands = 2 : i64, tpu.core_type = #tpu.core_type<tc>, window_params = [{transform_indices = @transform_0, window_bounds = array<i64: 1, 4, 2, 128>}, {transform_indices = @transform_1, window_bounds = array<i64: 1, 2, 128>}, {pipeline_mode = #tpu.pipeline_mode<synchronous>, transform_indices = @transform_2, window_bounds = array<i64: 4, 1, 128>}, {transform_indices = @transform_3, window_bounds = array<i64: 1, 4, 1, 1>}]} {
    %c0_i32 = arith.constant 0 : i32
    %0 = arith.cmpi eq, %arg1, %c0_i32 : i32
    %1 = arith.extui %0 : i1 to i32
    %c0_i32_0 = arith.constant 0 : i32
    %2 = arith.cmpi ne, %1, %c0_i32_0 : i32
    scf.if %2 {
      %cst_30 = arith.constant 0.000000e+00 : f32
      %41 = vector.broadcast %cst_30 : f32 to vector<4x1x128xf32>
      %c0_31 = arith.constant 0 : index
      %c0_32 = arith.constant 0 : index
      %c0_33 = arith.constant 0 : index
      %42 = vector.load %arg6[%c0_31, %c0_32, %c0_33] : memref<4x1x128xf32, #tpu.memory_space<vmem>>, vector<4x1x128xf32>
      tpu.vector_store %arg6[%c0_31, %c0_32, %c0_33], %41 {strides = array<i32>} : memref<4x1x128xf32, #tpu.memory_space<vmem>>, vector<4x1x128xf32>,
      %cst_34 = arith.constant 0.000000e+00 : f32
      %43 = vector.broadcast %cst_34 : f32 to vector<4x1x128xf32>
      %c0_35 = arith.constant 0 : index
      %c0_36 = arith.constant 0 : index
      %c0_37 = arith.constant 0 : index
      %44 = vector.load %arg7[%c0_35, %c0_36, %c0_37] : memref<4x1x128xf32, #tpu.memory_space<vmem>>, vector<4x1x128xf32>
      tpu.vector_store %arg7[%c0_35, %c0_36, %c0_37], %43 {strides = array<i32>} : memref<4x1x128xf32, #tpu.memory_space<vmem>>, vector<4x1x128xf32>,
    } else {
    }
    %c0 = arith.constant 0 : index
    %c0_1 = arith.constant 0 : index
    %c0_2 = arith.constant 0 : index
    %c0_3 = arith.constant 0 : index
    %3 = vector.load %arg2[%c0, %c0_1, %c0_2, %c0_3] : memref<1x4x2x128xf32, #tpu.memory_space<vmem>>, vector<1x4x2x128xf32>
    %4 = vector.shape_cast %3 : vector<1x4x2x128xf32> to vector<4x2x128xf32>
    %c0_4 = arith.constant 0 : index
    %c0_5 = arith.constant 0 : index
    %c0_6 = arith.constant 0 : index
    %5 = vector.load %arg3[%c0_4, %c0_5, %c0_6] : memref<1x2x128xi32, #tpu.memory_space<vmem>>, vector<1x2x128xi32>
    %6 = vector.shape_cast %5 : vector<1x2x128xi32> to vector<2x128xi32>
    %cst = arith.constant dense<0xFF800000> : vector<2x128xf32>
    %7 = vector.multi_reduction <maximumf>, %4, %cst [0] : vector<4x2x128xf32> to vector<2x128xf32>
    %8 = vector.shape_cast %7 : vector<2x128xf32> to vector<1x2x128xf32>
    %9 = vector.broadcast %8 : vector<1x2x128xf32> to vector<4x2x128xf32>
    %10 = arith.subf %4, %9 : vector<4x2x128xf32>
    %11 = math.exp %10 : vector<4x2x128xf32>
    %cst_7 = arith.constant dense<0.000000e+00> : vector<2x128xf32>
    %12 = vector.multi_reduction <add>, %11, %cst_7 [0] : vector<4x2x128xf32> to vector<2x128xf32>
    %13 = vector.shape_cast %12 : vector<2x128xf32> to vector<1x2x128xf32>
    %14 = tpu.reciprocal %13 {approx = true} : vector<1x2x128xf32> -> vector<1x2x128xf32>
    %15 = vector.broadcast %14 : vector<1x2x128xf32> to vector<4x2x128xf32>
    %16 = arith.mulf %11, %15 : vector<4x2x128xf32>
    %17 = vector.shape_cast %6 : vector<2x128xi32> to vector<1x2x128xi32>
    %c0_8 = arith.constant 0 : index
    %c0_9 = arith.constant 0 : index
    %c0_10 = arith.constant 0 : index
    %18 = vector.load %arg4[%c0_8, %c0_9, %c0_10] : memref<4x1x128xi32, #tpu.memory_space<vmem>>, vector<4x1x128xi32>
    %19 = vector.broadcast %17 : vector<1x2x128xi32> to vector<4x2x128xi32>
    %20 = vector.broadcast %18 : vector<4x1x128xi32> to vector<4x2x128xi32>
    %21 = arith.cmpi eq, %19, %20 : vector<4x2x128xi32>
    %c0_11 = arith.constant 0 : index
    %c0_12 = arith.constant 0 : index
    %c0_13 = arith.constant 0 : index
    %22 = vector.load %arg6[%c0_11, %c0_12, %c0_13] : memref<4x1x128xf32, #tpu.memory_space<vmem>>, vector<4x1x128xf32>
    %cst_14 = arith.constant 0.000000e+00 : f32
    %23 = vector.broadcast %cst_14 : f32 to vector<4x2x128xf32>
    %24 = arith.select %21, %16, %23 : vector<4x2x128xi1>, vector<4x2x128xf32>
    %cst_15 = arith.constant dense<0.000000e+00> : vector<4x128xf32>
    %25 = vector.multi_reduction <add>, %24, %cst_15 [1] : vector<4x2x128xf32> to vector<4x128xf32>
    %26 = vector.shape_cast %25 : vector<4x128xf32> to vector<4x1x128xf32>
    %27 = arith.addf %22, %26 : vector<4x1x128xf32>
    %c0_16 = arith.constant 0 : index
    %c0_17 = arith.constant 0 : index
    %c0_18 = arith.constant 0 : index
    %28 = vector.load %arg6[%c0_16, %c0_17, %c0_18] : memref<4x1x128xf32, #tpu.memory_space<vmem>>, vector<4x1x128xf32>
    tpu.vector_store %arg6[%c0_16, %c0_17, %c0_18], %27 {strides = array<i32>} : memref<4x1x128xf32, #tpu.memory_space<vmem>>, vector<4x1x128xf32>,
    %c0_19 = arith.constant 0 : index
    %c0_20 = arith.constant 0 : index
    %c0_21 = arith.constant 0 : index
    %29 = vector.load %arg7[%c0_19, %c0_20, %c0_21] : memref<4x1x128xf32, #tpu.memory_space<vmem>>, vector<4x1x128xf32>
    %cst_22 = arith.constant 1.000000e+00 : f32
    %cst_23 = arith.constant 0.000000e+00 : f32
    %30 = vector.broadcast %cst_22 : f32 to vector<4x2x128xf32>
    %31 = vector.broadcast %cst_23 : f32 to vector<4x2x128xf32>
    %32 = arith.select %21, %30, %31 : vector<4x2x128xi1>, vector<4x2x128xf32>
    %33 = arith.addf %16, %32 : vector<4x2x128xf32>
    %cst_24 = arith.constant dense<0.000000e+00> : vector<4x128xf32>
    %34 = vector.multi_reduction <add>, %33, %cst_24 [1] : vector<4x2x128xf32> to vector<4x128xf32>
    %35 = vector.shape_cast %34 : vector<4x128xf32> to vector<4x1x128xf32>
    %36 = arith.addf %29, %35 : vector<4x1x128xf32>
    %c0_25 = arith.constant 0 : index
    %c0_26 = arith.constant 0 : index
    %c0_27 = arith.constant 0 : index
    %37 = vector.load %arg7[%c0_25, %c0_26, %c0_27] : memref<4x1x128xf32, #tpu.memory_space<vmem>>, vector<4x1x128xf32>
    tpu.vector_store %arg7[%c0_25, %c0_26, %c0_27], %36 {strides = array<i32>} : memref<4x1x128xf32, #tpu.memory_space<vmem>>, vector<4x1x128xf32>,
    %c0_i32_28 = arith.constant 0 : i32
    %38 = arith.cmpi eq, %arg1, %c0_i32_28 : i32
    %39 = arith.extui %38 : i1 to i32
    %c0_i32_29 = arith.constant 0 : i32
    %40 = arith.cmpi ne, %39, %c0_i32_29 : i32
    scf.if %40 {
      %c0_30 = arith.constant 0 : index
      %c0_31 = arith.constant 0 : index
      %c0_32 = arith.constant 0 : index
      %41 = vector.load %arg6[%c0_30, %c0_31, %c0_32] : memref<4x1x128xf32, #tpu.memory_space<vmem>>, vector<4x1x128xf32>
      %cst_33 = arith.constant dense<0.000000e+00> : vector<4x1xf32>
      %42 = vector.multi_reduction <add>, %41, %cst_33 [2] : vector<4x1x128xf32> to vector<4x1xf32>
      %43 = vector.shape_cast %42 : vector<4x1xf32> to vector<4x1x1xf32>
      %c0_34 = arith.constant 0 : index
      %c0_35 = arith.constant 0 : index
      %c0_36 = arith.constant 0 : index
      %44 = vector.load %arg7[%c0_34, %c0_35, %c0_36] : memref<4x1x128xf32, #tpu.memory_space<vmem>>, vector<4x1x128xf32>
      %cst_37 = arith.constant dense<0.000000e+00> : vector<4x1xf32>
      %45 = vector.multi_reduction <add>, %44, %cst_37 [2] : vector<4x1x128xf32> to vector<4x1xf32>
      %46 = vector.shape_cast %45 : vector<4x1xf32> to vector<4x1x1xf32>
      %cst_38 = arith.constant 0.000000e+00 : f32
      %47 = vector.broadcast %cst_38 : f32 to vector<4x1x1xf32>
      %48 = arith.subf %46, %47 : vector<4x1x1xf32>
      %cst_39 = arith.constant 2.000000e+00 : f32
      %49 = vector.broadcast %cst_39 : f32 to vector<4x1x1xf32>
      %50 = arith.mulf %49, %43 : vector<4x1x1xf32>
      %cst_40 = arith.constant 1.000000e+00 : f32
      %51 = vector.broadcast %cst_40 : f32 to vector<4x1x1xf32>
      %52 = arith.addf %50, %51 : vector<4x1x1xf32>
      %cst_41 = arith.constant 1.000000e+00 : f32
      %53 = vector.broadcast %cst_41 : f32 to vector<4x1x1xf32>
      %54 = arith.addf %48, %53 : vector<4x1x1xf32>
      %55 = arith.divf %52, %54 : vector<4x1x1xf32>
      %c0_42 = arith.constant 0 : index
      %c0_43 = arith.constant 0 : index
      %c0_44 = arith.constant 0 : index
      %c0_45 = arith.constant 0 : index
      %56 = vector.load %arg5[%c0_42, %c0_43, %c0_44, %c0_45] : memref<1x4x1x1xf32, #tpu.memory_space<vmem>>, vector<1x4x1x1xf32>
      %57 = vector.shape_cast %56 : vector<1x4x1x1xf32> to vector<4x1x1xf32>
      %58 = vector.shape_cast %55 : vector<4x1x1xf32> to vector<1x4x1x1xf32>
      tpu.vector_store %arg5[%c0_42, %c0_43, %c0_44, %c0_45], %58 {strides = array<i32>} : memref<1x4x1x1xf32, #tpu.memory_space<vmem>>, vector<1x4x1x1xf32>,
    } else {
    }
    return
  }
  func.func @transform_0(%arg0: i32, %arg1: i32) -> (i32, i32, i32, i32) {
    %c0_i32 = arith.constant 0 : i32
    %c0_i32_0 = arith.constant 0 : i32
    %c0_i32_1 = arith.constant 0 : i32
    return %arg0, %c0_i32, %arg1, %c0_i32_0 : i32, i32, i32, i32
  }
  func.func @transform_1(%arg0: i32, %arg1: i32) -> (i32, i32, i32) {
    %c0_i32 = arith.constant 0 : i32
    %c0_i32_0 = arith.constant 0 : i32
    return %arg0, %arg1, %c0_i32 : i32, i32, i32
  }
  func.func @transform_2(%arg0: i32, %arg1: i32) -> (i32, i32, i32) {
    %c0_i32 = arith.constant 0 : i32
    %c0_i32_0 = arith.constant 0 : i32
    %c0_i32_1 = arith.constant 0 : i32
    %c0_i32_2 = arith.constant 0 : i32
    return %c0_i32, %c0_i32_0, %c0_i32_1 : i32, i32, i32
  }
  func.func @transform_3(%arg0: i32, %arg1: i32) -> (i32, i32, i32, i32) {
    %c0_i32 = arith.constant 0 : i32
    %c0_i32_0 = arith.constant 0 : i32
    %c0_i32_1 = arith.constant 0 : i32
    %c0_i32_2 = arith.constant 0 : i32
    return %arg0, %c0_i32, %c0_i32_0, %c0_i32_1 : i32, i32, i32, i32
  }
}

</mosaic_0001>

<bundles_post_ra>
// kernel: tpu_custom_call.1
= control target key start
LH: loop header
LB: loop body
LE: loop exit
PB: predicated region body
PF: predicated region fallthrough
CT: control target
= control target key end

     0   :  { %s1058_s0 = inlined_call_operand.hbm [shape: f32[2,4,2,128], index: 0, kind: input, shape index: {}]   ;;  %s1059_s1 = inlined_call_operand.hbm [shape: s32[2,2,128], index: 1, kind: input, shape index: {}]   ;;  %s1060_s2 = inlined_call_operand.hbm [shape: s32[4,1,128], index: 2, kind: input, shape index: {}]   ;;  %s1061_s3 = inlined_call_operand.vmem [shape: f32[2,4,1,1], index: 3, kind: output, shape index: {}]  }
   0x1   :  { %1063 = sst [smem:[#allocation12_spill]] %s1058_s0 }
   0x2   :  { %1064 = sst [smem:[#allocation13_spill]] %s1060_s2 }
   0x3   :  { %8 = vsyncpa [#allocation5], 0 }
   0x4   :  { %10 = vsyncpa [#allocation5 + $0x1], 0 }
   0x5   :  { %11 = vsyncpa [#allocation7], 0 }
   0x6   :  { %13 = vsyncpa [#allocation7 + $0x1], 0  ;;  %s878_s12 = smov 0   ;;  %s880_s13 = smov 0  }
   0x7   :  { %s882_s14 = smov 0   ;;  %s884_s15 = smov 0  }
   0x8   :  { %s886_s16 = smov 0   ;;  %s888_s17 = smov 0  }
   0x9 LB: > { %s1062_s18 = sadd.s32 4294967295, %s848_s17   ;;  %p53_p0 = scmp.ne.s32.totalorder %s832_s13, %s828_s12  ;;  %s848_s17 = sphi %s888_s17, %s19_s17   ;;  %s844_s16 = sphi %s886_s16, %s1077_s16   ;;  %s840_s15 = sphi %s884_s15, %s1076_s15   ;;  %s836_s14 = sphi %s882_s14, %s1075_s14   ;;  %s832_s13 = sphi %s880_s13, %s1074_s13   ;;  %s828_s12 = sphi %s878_s12, %s1073_s12  }
   0xa   : > { %p910_p1 = scmp.eq.s32.totalorder %s1062_s18, 0  ;;  %p594_p2 = scmp.ge.s32.totalorder %s848_s17, 1 }
   0xb   : > { %p139_p3 = scmp.lt.s32.totalorder %s848_s17, 3  ;;  %s850_s22 = smov [#allocation8]  }
   0xc   : > { %p918_p4 = por %p910_p1, %p53_p0  ;;  %s151_s23 = sshll.u32 %s850_s22, 4  ;;  %s152_s23 = int_to_ptr.vmem [resolvable:$true] %s151_s23 }
   0xd   : > { %p922_p5 = pnand %p594_p2, %p139_p3  ;;  %s31_s25 = sadd.s32 1, %s844_s16 }
   0xe   : > { %s719_s26 = scalar_lea.vmem %s152_s23, 64  ;;  %p727_p12 = scmp.lt.s32.totalorder %s152_s23, %s152_s23 }
   0xf   : > { %p622_p6 = pneg %p922_p5  ;;  %p720_p9 = scmp.ne.s32.totalorder %s152_s23, %s719_s26 }
  0x10   : > { %p728_p13 = scmp.lt.s32.totalorder %s719_s26, %s719_s26 }
  0x11   : > { %p930_p7 = pnand %p622_p6, %p910_p1 }
  0x12   : > { %p729_p0 = por %p728_p13, %p727_p12 }
  0x13   : > { %p710_p8 = pneg %p930_p7 }
  0x15   : > { %p722_p10 = pnand %p720_p9, %p710_p8 }
  0x17   : > { %p723_p11 = pneg %p722_p10 }
  0x19   : > { %p730_p2 = pnand %p729_p0, %p723_p11 }
  0x1b   : > { %733 = shalt.err (!%p730_p2)
}
  0x1c   : > { %s851_s27 = smov 16   ;;  %s852_s28 = smov 1  }
  0x1d   : > { %s1069_s2 = sld [smem:[#allocation13_spill]]  ;;  %p33_p3 = scmp.ge.s32.totalorder %s31_s25, 2 }
  0x1e   : > { %s40_s4 = sadd.s32 1, %s836_s14  ;;  %p47_p6 = scmp.ne.s32.totalorder %s836_s14, %s832_s13 }
  0x1f   : > { %p48_p8 = scmp.eq.s32.totalorder %s848_s17, 0  ;;  %s1079_s25 = smov (%p33_p3, %s31_s25), 0 }
  0x20   : > { %p634_p10 = scmp.lt.s32.totalorder %s848_s17, 2  ;;  %s35_s5 = ssub.s32 %s844_s16, %s1079_s25 }
  0x21   : > { %p49_p9 = por %p48_p8, %p47_p6  ;;  %s952_s6 = sand.u32 1, %s836_s14  }
  0x22   : > { %p38_p11 = scmp.eq.s32.totalorder %s35_s5, 0  ;;  %s597_s7 = sshll.u32 %s952_s6, 3 }
  0x23   : > { %625 = dma.hbm_to_vmem [thread:$0]  (!%p930_p7), %s1069_s2, 64, %s152_s23, [#allocation7], %s851_s27, %s851_s27, %s852_s28  }
  0x24   : > { %s613_s8 = sshll.u32 %s844_s16, 7  ;;  %s1070_s0 = sld [smem:[#allocation12_spill]] }
  0x25   : > { %s957_s9 = scalar_select %p38_p11, %s836_s14, %s40_s4  }
  0x26   : > { %s169_s22 = scalar_lea.vmem [#allocation4], %s597_s7  ;;  %p962_p7 = pnand %p634_p10, %p49_p9 }
  0x27   : > { %s177_s23 = sshll.u32 %s169_s22, 4  ;;  %s166_s26 = scalar_lea.sflag [#allocation5], %s952_s6  ;;  %s178_s23 = int_to_ptr.vmem [resolvable:$true] %s177_s23 }
  0x28   : > { %p736_p12 = pneg %p962_p7  ;;  %s747_s27 = scalar_lea.vmem %s178_s23, 128 }
  0x29   : > { %p748_p13 = scmp.ne.s32.totalorder %s178_s23, %s747_s27  ;;  %s853_s28 = smov [#allocation4]  }
  0x2a   : > { %s176_s12 = scalar_lea.hbm %s1070_s0, %s613_s8  ;;  %s752_s29 = sshll.u32 %s853_s28, 4  ;;  %s753_s29 = int_to_ptr.vmem [resolvable:$false] %s752_s29 }
  0x2b   : > { %p750_p0 = pnand %p748_p13, %p736_p12  ;;  %s754_s30 = scalar_lea.vmem %s753_s29, 256 }
  0x2c   : > { %p755_p3 = scmp.lt.s32.totalorder %s178_s23, %s753_s29  ;;  %p756_p6 = scmp.lt.s32.totalorder %s754_s30, %s747_s27 }
  0x2d   : > { %p751_p2 = pneg %p750_p0 }
  0x2e   : > { %p757_p8 = por %p756_p6, %p755_p3 }
  0x30   : > { %p758_p9 = pnand %p757_p8, %p751_p2 }
  0x32   : > { %761 = shalt.err (!%p758_p9)
}
  0x33   : > { %s854_s4 = smov 32   ;;  %s855_s5 = smov 2  }
  0x34   : > { %629 = dma.hbm_to_vmem [thread:$0]  (!%p962_p7), %s176_s12, 128, %s178_s23, %s166_s26, %s854_s4, %s854_s4, %s855_s5  }
  0x35   : > { %s187_s7 = sand.u32 1, %s848_s17   ;;  %s600_s8 = sshll.u32 %s952_s6, 1 }
  0x36   : > { %s601_s10 = sshll.u32 %s844_s16, 5  ;;  %s191_s11 = scalar_lea.vmem [#allocation6], %s600_s8 }
  0x37   : > { %s199_s22 = sshll.u32 %s191_s11, 4  ;;  %s197_s27 = scalar_lea.hbm %s1059_s1, %s601_s10  ;;  %s200_s22 = int_to_ptr.vmem [resolvable:$true] %s199_s22 }
  0x38   : > { %s188_s30 = scalar_lea.sflag [#allocation7], %s187_s7  ;;  %s775_s18 = scalar_lea.vmem %s200_s22, 32 }
  0x39   : > { %p776_p10 = scmp.ne.s32.totalorder %s200_s22, %s775_s18  ;;  %s856_s0 = smov [#allocation6]  }
  0x3a   : > { %s780_s2 = sshll.u32 %s856_s0, 4  ;;  %s781_s2 = int_to_ptr.vmem [resolvable:$false] %s780_s2 }
  0x3b   : > { %p778_p11 = pnand %p776_p10, %p736_p12  ;;  %s782_s12 = scalar_lea.vmem %s781_s2, 64 }
  0x3c   : > { %p783_p0 = scmp.lt.s32.totalorder %s200_s22, %s781_s2  ;;  %p784_p2 = scmp.lt.s32.totalorder %s782_s12, %s775_s18 }
  0x3d   : > { %p779_p13 = pneg %p778_p11 }
  0x3e   : > { %p785_p3 = por %p784_p2, %p783_p0 }
  0x40   : > { %p786_p6 = pnand %p785_p3, %p779_p13 }
  0x42   : > { %789 = shalt.err (!%p786_p6)
}
  0x43   : > { %632 = dma.hbm_to_vmem [thread:$0]  (!%p962_p7), %s197_s27, 32, %s200_s22, %s188_s30  }
  0x44   : > { %208 = sbr.rel (%p922_p5) target bundleno = 320 (0x140), region = 32  ;;  %s210_s6 = sand.u32 (!%p922_p5), 1, %s832_s13  }
  0x45   : > { %s603_s23 = sshll.u32 (!%p922_p5), %s210_s6, 3  ;;  %s211_s26 = scalar_lea.sflag (!%p922_p5), [#allocation5], %s210_s6 }
  0x46   : > { %s214_s4 = scalar_lea.vmem (!%p922_p5), [#allocation4], %s603_s23 }
  0x49   : > { %815 = dma.done.wait (%p918_p4), %s211_s26, 128  }
  0x4a   : > { %817 = vsyncadd (%p918_p4), %s211_s26, 4294967168  ;;  %s1072_s0 = sadd.s32 4294967295, %s848_s17   ;;  %s604_s18 = sshll.u32 %s210_s6, 1 }
  0x4b   : > { %s219_s2 = sand.u32 1, %s1072_s0   ;;  %s994_s5 = scalar_lea.vmem [#allocation6], %s604_s18 }
  0x4c   : > { %s220_s24 = scalar_lea.sflag [#allocation7], %s219_s2 }
  0x4d   : > { %819 = dma.done.wait (%p918_p4), %s220_s24, 32  }
  0x4e   : > { %821 = vsyncadd (%p918_p4), %s220_s24, 4294967264 }
  0x4f   : > { %823 = dma.done.wait (%p910_p1), [#allocation7], 64  }
  0x50   : > { %825 = vsyncadd (%p910_p1), [#allocation7], 4294967232  ;;  %v857_v0 = vmov 0.0   ;;  %vm275_vm0 = vcmask 1041408   ;;  %v270_v1 = vld [vmem:[%s214_s4] sm:$0x3] }
  0x51   : > { %268 = vst [vmem:[#allocation3 + $0x2] sm:$0x1] %v857_v0  ;;  %262 = vst [vmem:[#allocation2] sm:$0x1] %v857_v0  ;;  %v271_v2 = vld [vmem:[%s214_s4 + $0x2] sm:$0x3] }
  0x52   : > { %263 = vst [vmem:[#allocation2 + $0x1] sm:$0x1] %v857_v0  ;;  %264 = vst [vmem:[#allocation2 + $0x2] sm:$0x1] %v857_v0  ;;  %v272_v3 = vld [vmem:[%s214_s4 + $0x4] sm:$0x3] }
  0x53   : > { %265 = vst [vmem:[#allocation2 + $0x3] sm:$0x1] %v857_v0  ;;  %266 = vst [vmem:[#allocation3] sm:$0x1] %v857_v0  ;;  %v273_v4 = vld [vmem:[%s214_s4 + $0x6] sm:$0x3] }
  0x54   : > { %267 = vst [vmem:[#allocation3 + $0x1] sm:$0x1] %v857_v0  ;;  %269 = vst [vmem:[#allocation3 + $0x3] sm:$0x1] %v857_v0  ;;  %v276_v5 = vsel %vm275_vm0, %v270_v1, -inf  ;;  %v277_v6 = vsel %vm275_vm0, %v271_v2, -inf }
  0x55   : > { %v278_v7 = vsel %vm275_vm0, %v272_v3, -inf  ;;  %v279_v8 = vsel %vm275_vm0, %v273_v4, -inf  ;;  %v280_v9 = vmax.f32 %v276_v5, %v277_v6  ;;  %v274_v31 = vld [vmem:[%s994_s5] sm:$0x3]  ;;  %v609_v32 = vld [vmem:[#allocation8 + $0x2] ss:$0 sm:$0xff] }
  0x56   : > { %v281_v10 = vmax.f32 %v278_v7, %v279_v8  ;;  %v607_v33 = vld [vmem:[#allocation8] ss:$0 sm:$0xff]  ;;  %v610_v34 = vld [vmem:[#allocation8 + $0x3] ss:$0 sm:$0xff]  ;;  %v608_v35 = vld [vmem:[#allocation8 + $0x1] ss:$0 sm:$0xff]  ;;  %vm329_vm1 = vcmp.eq.s32.totalorder %v274_v31, %v609_v32 }
  0x57   : > { %vm327_vm2 = vcmp.eq.s32.totalorder %v274_v31, %v607_v33  ;;  %vm330_vm3 = vcmp.eq.s32.totalorder %v274_v31, %v610_v34  ;;  %vm328_vm4 = vcmp.eq.s32.totalorder %v274_v31, %v608_v35  ;;  %v381_v37 = vsel %vm329_vm1, 1.0, %v857_v0  ;;  %p254_p1 = scmp.lt.s32.totalorder %s840_s15, 1 }
  0x58   : > { %v282_v11 = vmax.f32 %v280_v9, %v281_v10  ;;  %v379_v38 = vsel %vm327_vm2, 1.0, %v857_v0  ;;  %v382_v39 = vsel %vm330_vm3, 1.0, %v857_v0  ;;  %v380_v40 = vsel %vm328_vm4, 1.0, %v857_v0 }
  0x59   : > { %vm430_vm5 = vcmask 1040384   ;;  %s1081_s15 = smov (!%p254_p1, %s840_s15), 1  ;;  %vm479_vm6 = vcmask 0  }
  0x5a   : > { %v283_v12 = vsub.f32 %v270_v1, %v282_v11  ;;  %v284_v13 = vsub.f32 %v271_v2, %v282_v11  ;;  %v285_v14 = vsub.f32 %v272_v3, %v282_v11  ;;  %v286_v15 = vsub.f32 %v273_v4, %v282_v11  ;;  %s606_s19 = sshll.u32 %s1081_s15, 2 }
  0x5b   : > { %v378_v31 = vld [vmem:[#allocation3 + $0x3] sm:$0x1]  ;;  %v376_v32 = vld [vmem:[#allocation3 + $0x1] sm:$0x1]  ;;  %s257_s7 = scalar_lea.vmem %s1061_s3, %s606_s19 }
  0x5c   : > { %v287_v16 = vmul.f32 1.442695, %v283_v12  ;;  %v289_v17 = vmul.f32 1.442695, %v284_v13  ;;  %v291_v18 = vmul.f32 1.442695, %v285_v14 }
  0x5d   : > { %v293_v19 = vmul.f32 1.442695, %v286_v15 }
  0x5e   : > { %690 = vpow2.f32 %v287_v16 }
  0x5f   : > { %692 = vpow2.f32 %v289_v17 }
  0x60   : > { %694 = vpow2.f32 %v291_v18 }
  0x61   : > { %696 = vpow2.f32 %v293_v19 }
  0x6b   : > { %v691_v20 = vpop.eup %690 }
  0x6c   : > { %v693_v21 = vpop.eup %692  ;;  %v295_v22 = vsel %vm275_vm0, %v691_v20, 0.0 }
  0x6d   : > { %v695_v23 = vpop.eup %694  ;;  %v296_v24 = vsel %vm275_vm0, %v693_v21, 0.0 }
  0x6e   : > { %v697_v25 = vpop.eup %696  ;;  %v297_v26 = vadd.f32 %v296_v24, %v295_v22  ;;  %v298_v27 = vsel %vm275_vm0, %v695_v23, 0.0 }
  0x6f   : > { %v300_v28 = vsel %vm275_vm0, %v697_v25, 0.0 }
  0x70   : > { %v299_v29 = vadd.f32 %v298_v27, %v297_v26 }
  0x72   : > { %v301_v30 = vadd.f32 %v300_v28, %v299_v29 }
  0x74   : > { %698 = vrcp.f32 %v301_v30  ;;  %v375_v30 = vld [vmem:[#allocation3] sm:$0x1] }
  0x81   : > { %v699_v36 = vpop.eup %698 }
  0x82   : > { %v305_v41 = vmul.f32 %v699_v36, %v695_v23  ;;  %v303_v42 = vmul.f32 %v699_v36, %v691_v20  ;;  %v306_v43 = vmul.f32 %v699_v36, %v697_v25  ;;  %v304_v44 = vmul.f32 %v699_v36, %v693_v21  ;;  %v377_v25 = vld [vmem:[#allocation3 + $0x2] sm:$0x1] }
  0x84   : > { %v385_v45 = vadd.f32 %v381_v37, %v305_v41  ;;  %v383_v46 = vadd.f32 %v379_v38, %v303_v42  ;;  %v386_v47 = vadd.f32 %v382_v39, %v306_v43  ;;  %v384_v48 = vadd.f32 %v380_v40, %v304_v44 }
  0x85   : > { %v335_v49 = vsel %vm327_vm2, %v303_v42, 0.0  ;;  %v336_v50 = vsel %vm328_vm4, %v304_v44, 0.0  ;;  %v337_v51 = vsel %vm329_vm1, %v305_v41, 0.0  ;;  %v338_v52 = vsel %vm330_vm3, %v306_v43, 0.0  ;;  %v331_v41 = vld [vmem:[#allocation2] sm:$0x1] }
  0x86   : > { %v401_v53 = vsel %vm275_vm0, %v385_v45, 0.0  ;;  %v387_v54 = vsel %vm275_vm0, %v383_v46, 0.0  ;;  %v408_v55 = vsel %vm275_vm0, %v386_v47, 0.0  ;;  %v394_v56 = vsel %vm275_vm0, %v384_v48, 0.0 }
  0x87   : > { %v402_v57 = vrot.slane %v401_v53, 4  ;;  %v388_v58 = vrot.slane %v387_v54, 4  ;;  %v409_v59 = vrot.slane %v408_v55, 4  ;;  %v395_v60 = vrot.slane %v394_v56, 4 }
  0x88   : > { %v339_v61 = vsel %vm275_vm0, %v335_v49, 0.0  ;;  %v346_v62 = vsel %vm275_vm0, %v336_v50, 0.0  ;;  %v353_v63 = vsel %vm275_vm0, %v337_v51, 0.0  ;;  %v360_v0 = vsel %vm275_vm0, %v338_v52, 0.0  ;;  %v332_v50 = vld [vmem:[#allocation2 + $0x1] sm:$0x1] }
  0x89   : > { %v403_v1 = vadd.f32 %v402_v57, %v401_v53  ;;  %v389_v2 = vadd.f32 %v388_v58, %v387_v54  ;;  %v410_v3 = vadd.f32 %v409_v59, %v408_v55  ;;  %v396_v4 = vadd.f32 %v395_v60, %v394_v56  ;;  %v333_v51 = vld [vmem:[#allocation2 + $0x2] sm:$0x1]  ;;  %v334_v52 = vld [vmem:[#allocation2 + $0x3] sm:$0x1] }
  0x8a   : > { %v340_v5 = vrot.slane %v339_v61, 4  ;;  %v347_v6 = vrot.slane %v346_v62, 4  ;;  %v354_v7 = vrot.slane %v353_v63, 4  ;;  %v361_v8 = vrot.slane %v360_v0, 4 }
  0x8b   : > { %v404_v9 = vrot.slane %v403_v1, 2  ;;  %v390_v10 = vrot.slane %v389_v2, 2  ;;  %v411_v11 = vrot.slane %v410_v3, 2  ;;  %v397_v12 = vrot.slane %v396_v4, 2 }
  0x8c   : > { %v341_v13 = vadd.f32 %v340_v5, %v339_v61  ;;  %v348_v14 = vadd.f32 %v347_v6, %v346_v62  ;;  %v355_v15 = vadd.f32 %v354_v7, %v353_v63  ;;  %v362_v16 = vadd.f32 %v361_v8, %v360_v0 }
  0x8d   : > { %v405_v17 = vadd.f32 %v404_v9, %v403_v1  ;;  %v391_v18 = vadd.f32 %v390_v10, %v389_v2  ;;  %v412_v19 = vadd.f32 %v411_v11, %v410_v3  ;;  %v398_v20 = vadd.f32 %v397_v12, %v396_v4 }
  0x8e   : > { %v342_v21 = vrot.slane %v341_v13, 2  ;;  %v349_v22 = vrot.slane %v348_v14, 2  ;;  %v356_v23 = vrot.slane %v355_v15, 2  ;;  %v363_v24 = vrot.slane %v362_v16, 2 }
  0x8f   : > { %v406_v26 = vrot.slane %v405_v17, 1  ;;  %v392_v27 = vrot.slane %v391_v18, 1  ;;  %v413_v28 = vrot.slane %v412_v19, 1  ;;  %v399_v29 = vrot.slane %v398_v20, 1 }
  0x90   : > { %v343_v33 = vadd.f32 %v342_v21, %v341_v13  ;;  %v350_v34 = vadd.f32 %v349_v22, %v348_v14  ;;  %v357_v35 = vadd.f32 %v356_v23, %v355_v15  ;;  %v364_v36 = vadd.f32 %v363_v24, %v362_v16 }
  0x91   : > { %v407_v37 = vadd.f32 %v406_v26, %v405_v17  ;;  %v393_v38 = vadd.f32 %v392_v27, %v391_v18  ;;  %v414_v39 = vadd.f32 %v413_v28, %v412_v19  ;;  %v400_v40 = vadd.f32 %v399_v29, %v398_v20 }
  0x92   : > { %v344_v42 = vrot.slane %v343_v33, 1  ;;  %v351_v43 = vrot.slane %v350_v34, 1  ;;  %v358_v44 = vrot.slane %v357_v35, 1  ;;  %v365_v45 = vrot.slane %v364_v36, 1 }
  0x93   : > { %v417_v46 = vadd.f32 %v407_v37, %v377_v25  ;;  %v415_v47 = vadd.f32 %v393_v38, %v375_v30  ;;  %v418_v48 = vadd.f32 %v414_v39, %v378_v31  ;;  %v416_v49 = vadd.f32 %v400_v40, %v376_v32 }
  0x94   : > { %v345_v53 = vadd.f32 %v344_v42, %v343_v33  ;;  %v352_v54 = vadd.f32 %v351_v43, %v350_v34  ;;  %v359_v55 = vadd.f32 %v358_v44, %v357_v35  ;;  %v366_v56 = vadd.f32 %v365_v45, %v364_v36 }
  0x95   : > { %421 = vst [vmem:[#allocation3 + $0x2] sm:$0x1] %v417_v46  ;;  %419 = vst [vmem:[#allocation3] sm:$0x1] %v415_v47 }
  0x96   : > { %422 = vst [vmem:[#allocation3 + $0x3] sm:$0x1] %v418_v48  ;;  %420 = vst [vmem:[#allocation3 + $0x1] sm:$0x1] %v416_v49  ;;  %v367_v57 = vadd.f32 %v345_v53, %v331_v41  ;;  %v368_v58 = vadd.f32 %v352_v54, %v332_v50  ;;  %v369_v59 = vadd.f32 %v359_v55, %v333_v51 }
  0x97   : > { %v370_v60 = vadd.f32 %v366_v56, %v334_v52 }
  0x98   : > { %371 = vst [vmem:[#allocation2] sm:$0x1] %v367_v57  ;;  %372 = vst [vmem:[#allocation2 + $0x1] sm:$0x1] %v368_v58 }
  0x99   : > { %373 = vst [vmem:[#allocation2 + $0x2] sm:$0x1] %v369_v59  ;;  %374 = vst [vmem:[#allocation2 + $0x3] sm:$0x1] %v370_v60 }
  0x9c   : > { %v445_v61 = vld [vmem:[#allocation3 + $0x2] sm:$0x1]  ;;  %v443_v62 = vld [vmem:[#allocation3] sm:$0x1] }
  0x9d   : > { %v446_v63 = vld [vmem:[#allocation3 + $0x3] sm:$0x1]  ;;  %v453_v0 = vsel %vm430_vm5, %v445_v61, 0.0  ;;  %v447_v1 = vsel %vm430_vm5, %v443_v62, 0.0  ;;  %v444_v2 = vld [vmem:[#allocation3 + $0x1] sm:$0x1] }
  0x9e   : > { %454 = vadd.xlane.f32.xlu1 %v453_v0  ;;  %448 = vadd.xlane.f32.xlu0 %v447_v1  ;;  %v456_v3 = vsel %vm430_vm5, %v446_v63, 0.0  ;;  %v450_v4 = vsel %vm430_vm5, %v444_v2, 0.0 }
  0x9f   : > { %v426_v5 = vld [vmem:[#allocation2] sm:$0x1]  ;;  %v427_v6 = vld [vmem:[#allocation2 + $0x1] sm:$0x1] }
  0xa0   : > { %v431_v7 = vsel %vm430_vm5, %v426_v5, 0.0  ;;  %v434_v8 = vsel %vm430_vm5, %v427_v6, 0.0  ;;  %v428_v9 = vld [vmem:[#allocation2 + $0x2] sm:$0x1]  ;;  %v429_v10 = vld [vmem:[#allocation2 + $0x3] sm:$0x1] }
  0xa1   : > { %v437_v11 = vsel %vm430_vm5, %v428_v9, 0.0  ;;  %v440_v12 = vsel %vm430_vm5, %v429_v10, 0.0 }
  0xa2   : > { %457 = vadd.xlane.f32.xlu1 %v456_v3  ;;  %451 = vadd.xlane.f32.xlu0 %v450_v4 }
  0xa6   : > { %432 = vadd.xlane.f32.xlu0 %v431_v7  ;;  %435 = vadd.xlane.f32.xlu1 %v434_v8 }
  0xaa   : > { %438 = vadd.xlane.f32.xlu0 %v437_v11  ;;  %441 = vadd.xlane.f32.xlu1 %v440_v12 }
 0x127   : > { %v455_v13 = vpop.xlane.xlu1 %454  ;;  %v449_v14 = vpop.xlane.xlu0 %448 }
 0x128   : > { %v469_v15 = vadd.f32 1.0, %v455_v13  ;;  %v467_v16 = vadd.f32 1.0, %v449_v14 }
 0x12a   : > { %700 = vrcp.f32 %v469_v15 }
 0x12b   : > { %702 = vrcp.f32 %v467_v16  ;;  %v458_v17 = vpop.xlane.xlu1 %457  ;;  %v452_v18 = vpop.xlane.xlu0 %451 }
 0x12c   : > { %v470_v19 = vadd.f32 1.0, %v458_v17  ;;  %v468_v20 = vadd.f32 1.0, %v452_v18 }
 0x12e   : > { %704 = vrcp.f32 %v470_v19 }
 0x12f   : > { %706 = vrcp.f32 %v468_v20  ;;  %v433_v21 = vpop.xlane.xlu0 %432  ;;  %v436_v22 = vpop.xlane.xlu1 %435 }
 0x130   : > { %v459_v23 = vmul.f32 2.0, %v433_v21  ;;  %v460_v31 = vmul.f32 2.0, %v436_v22 }
 0x132   : > { %v463_v28 = vadd.f32 1.0, %v459_v23  ;;  %v464_v37 = vadd.f32 1.0, %v460_v31 }
 0x133   : > { %v439_v24 = vpop.xlane.xlu0 %438  ;;  %v442_v25 = vpop.xlane.xlu1 %441 }
 0x134   : > { %v461_v26 = vmul.f32 2.0, %v439_v24  ;;  %v462_v27 = vmul.f32 2.0, %v442_v25 }
 0x136   : > { %v465_v29 = vadd.f32 1.0, %v461_v26  ;;  %v466_v34 = vadd.f32 1.0, %v462_v27 }
 0x137   : > { %v701_v30 = vpop.eup %700 }
 0x138   : > { %v703_v32 = vpop.eup %702  ;;  %v476_v33 = vmul.f32 %v701_v30, %v465_v29 }
 0x139   : > { %v472_v35 = vmul.f32 %v703_v32, %v463_v28 }
 0x13a   : > { %482 = vst.msk [vmem:[%s257_s7 + $0x2] sm:$0x1] %vm479_vm6, %v476_v33 }
 0x13b   : > { %v705_v36 = vpop.eup %704  ;;  %480 = vst.msk [vmem:[%s257_s7] sm:$0x1] %vm479_vm6, %v472_v35 }
 0x13c   : > { %v707_v38 = vpop.eup %706  ;;  %v478_v39 = vmul.f32 %v705_v36, %v466_v34 }
 0x13d   : > { %v474_v40 = vmul.f32 %v707_v38, %v464_v37 }
 0x13e   : > { %483 = vst.msk [vmem:[%s257_s7 + $0x3] sm:$0x1] %vm479_vm6, %v478_v39 }
 0x13f   : > { %481 = vst.msk [vmem:[%s257_s7 + $0x1] sm:$0x1] %vm479_vm6, %v474_v40 }
 0x140 PF: > { %s19_s17 = sadd.s32 1, %s848_s17   ;;  %s1073_s12 = smov %s832_s13 }
 0x141   : > { %p16_p4 = scmp.ge.s32.totalorder %s19_s17, 4   ;;  %s1074_s13 = smov %s836_s14 }
 0x142   : > { %s1075_s14 = smov %s957_s9  ;;  %s1076_s15 = smov %s844_s16 }
 0x143   : > { %s1077_s16 = smov %s1079_s25  ;;  %18 = sbr.rel (!%p16_p4) target bundleno = 9 (0x9), region = 97 }
 0x148   :  { %503 = vsyncpa [#allocation5], 1 }
 0x149   :  { %505 = vsyncpa [#allocation5 + $0x1], 1 }
 0x14a   :  { %506 = vsyncpa [#allocation7], 1 }
 0x14b   :  { %508 = vsyncpa [#allocation7 + $0x1], 1 }

</bundles_post_ra>
